<compile_context>
chip_gen: v7x
topology: tpu7x:2x2x1
jax: 0.10.0
libtpu: 0.0.40
codegen_flags: <defaults>
</compile_context>

<pallas_src>
import functools

import jax
import jax.numpy as jnp
from jax.experimental import pallas as pl
from jax.experimental.pallas import tpu as pltpu


def _round_up(x, m):
    return (x + m - 1) // m * m


def _sigmoid(z):
    # sigmoid(z) == 0.5 * (tanh(z / 2) + 1): one EUP op per vreg instead of
    # exp + reciprocal (the EUP slot is what binds at small K on v6e/v7x).
    return 0.5 * jnp.tanh(0.5 * z) + 0.5


def _const_spec(shape, single_buffer):
    """BlockSpec for a VMEM-resident operand (constant index_map)."""
    index_map = lambda *_: (0,) * len(shape)
    if single_buffer:
        # The block never changes across grid steps, so the second pipeline
        # buffer is pure wasted VMEM (matters most on v7x's 64 MiB).
        return pl.BlockSpec(shape, index_map, pipeline_mode=pl.Buffered(1))
    return pl.BlockSpec(shape, index_map)


def _run_maybe_single_buffered(run):
    """Run with single-buffered resident weights; fall back to default
    double-buffering if this JAX build rejects pl.Buffered(1)."""
    try:
        return run(True)
    except Exception:
        return run(False)


def _vmem_limit_bytes(est_bytes):
    """Generation-aware VMEM budget: ~1.5x headroom over the estimate, capped
    at ~75% of physical VMEM (~48 MiB on v7x, ~96 MiB on v5e/v6e)."""
    try:
        cap = pltpu.get_tpu_info().vmem_capacity_bytes
    except Exception:
        cap = 64 * 1024 * 1024  # v7x-safe fallback if the query is unavailable
    return int(min(max(int(1.5 * est_bytes), 32 * 1024 * 1024), int(0.75 * cap)))


# ---------------------------------------------------------------------------
# Single LSTM cell step (exact nn.Module.forward semantics)
# ---------------------------------------------------------------------------

def _lstm_cell_kernel(x_ref, h_ref, c_ref, wx_ref, wh_ref, b_ref,
                      c_out_ref, h_out_ref, *, hp, hd):
    """One LSTM cell step on a (bt, ·) batch tile.

    x_ref  : (bt, D)      input
    h_ref  : (bt, H)      previous hidden state (unpadded)
    c_ref  : (bt, Hp)     previous cell state (lane-padded)
    wx_ref : (D,  4*Hp)   packed input weights  [i, f, c, o], per-gate padded
    wh_ref : (Hp, 4*Hp)   packed hidden weights, rows [H:Hp] are zero
    b_ref  : (1,  4*Hp)   packed bias (b_W + b_U per gate), per-gate padded
    """
    wx = wx_ref[...]
    wh = wh_ref[:hd, :]                       # only the real rows of U
    x = x_ref[...].astype(wx.dtype)           # allows bf16-stored weights
    h = h_ref[...].astype(wh.dtype)

    # Two accumulating MXU passes (same math as [x, h] @ [Wx; Wh]), f32 acc.
    gates = (jnp.dot(x, wx, preferred_element_type=jnp.float32)
             + jnp.dot(h, wh, preferred_element_type=jnp.float32)
             + b_ref[...].astype(jnp.float32))

    # Lane-aligned gate slices (hp is a multiple of 128).
    i_g = _sigmoid(gates[:, 0 * hp:1 * hp])
    f_g = _sigmoid(gates[:, 1 * hp:2 * hp])
    c_c = jnp.tanh(gates[:, 2 * hp:3 * hp])
    o_g = _sigmoid(gates[:, 3 * hp:4 * hp])

    # Gating math in f32 (v5e VPU/EUP have no bf16 path).
    c_new = f_g * c_ref[...].astype(jnp.float32) + i_g * c_c
    c_out_ref[...] = c_new.astype(c_out_ref.dtype)
    h_out_ref[...] = (o_g * jnp.tanh(c_new)).astype(h_out_ref.dtype)


def lstm_cell(x, c, h, wx, wh, b, *, block_b=256):
    """Fused Pallas LSTM cell step. Returns (c_out, h_out) of shape (B, H)."""
    B, D = x.shape
    H = h.shape[1]
    Hp4 = wx.shape[1]
    Hp = Hp4 // 4
    assert wx.shape == (D, Hp4) and wh.shape == (Hp, Hp4)
    assert Hp >= H and Hp % 128 == 0

    # Only the element-wise carried state needs lane padding; x/h stay as-is
    # (they are pure contraction operands).
    # TODO(synk): callers stepping a sequence should use lstm_sequence() so the
    # pad/slice happens once and the weights are DMA'd once, not per step.
    c_in = c if Hp == H else jnp.pad(c, ((0, 0), (0, Hp - H)))

    # Batch tiling: >=2 grid steps whenever possible so both v7x TensorCores
    # get work on the "parallel" batch axis; 8-row sublane granularity.
    if B <= 8:
        bt = B
    elif B <= block_b:
        bt = _round_up(pl.cdiv(B, 2), 8)
    else:
        bt = block_b
    grid = (pl.cdiv(B, bt),)

    w_item = jnp.dtype(wx.dtype).itemsize
    x_item = jnp.dtype(x.dtype).itemsize
    h_item = jnp.dtype(h.dtype).itemsize

    def vmem_limit(single_buffer):
        wbuf = 1 if single_buffer else 2
        resident = wbuf * (wx.size + wh.size) * w_item + 2 * b.size * 4
        per_step = bt * (D * x_item + H * h_item + 3 * Hp * 4)   # x,h,c in; c,h out
        temps = 2 * bt * 4 * Hp * 4 + bt * (D + H) * w_item      # gates temp + casts
        return _vmem_limit_bytes(resident + 2 * per_step + temps)

    kernel = functools.partial(_lstm_cell_kernel, hp=Hp, hd=H)

    def run(single_buffer_weights):
        wspec = lambda shape: _const_spec(shape, single_buffer_weights)
        return pl.pallas_call(
            kernel,
            out_shape=(
                jax.ShapeDtypeStruct((B, Hp), c.dtype),   # c_out (lane-padded)
                jax.ShapeDtypeStruct((B, Hp), h.dtype),   # h_out (lane-padded)
            ),
            grid=grid,
            in_specs=[
                pl.BlockSpec((bt, D), lambda i: (i, 0)),     # x
                pl.BlockSpec((bt, H), lambda i: (i, 0)),     # h
                pl.BlockSpec((bt, Hp), lambda i: (i, 0)),    # c (padded)
                wspec((D, Hp4)),                             # Wx (VMEM-resident)
                wspec((Hp, Hp4)),                            # Wh (VMEM-resident)
                wspec((1, Hp4)),                             # b  (VMEM-resident)
            ],
            out_specs=(
                pl.BlockSpec((bt, Hp), lambda i: (i, 0)),
                pl.BlockSpec((bt, Hp), lambda i: (i, 0)),
            ),
            compiler_params=pltpu.CompilerParams(
                dimension_semantics=("parallel",),
                vmem_limit_bytes=vmem_limit(single_buffer_weights),
            ),
        )(x, h, c_in, wx, wh, b)

    c_out, h_out = _run_maybe_single_buffered(run)
    if Hp != H:
        c_out = c_out[:, :H]
        h_out = h_out[:, :H]
    return c_out, h_out


# ---------------------------------------------------------------------------
# In-kernel time loop: apply the cell over a whole sequence in ONE pallas_call
# (weights resident, h/c carried in VMEM scratch, h_t streamed out per step).
# ---------------------------------------------------------------------------

def _lstm_seq_kernel(xs_ref, c0_ref, h0_ref, wx_ref, wh_ref, b_ref,
                     hs_ref, c_fin_ref, c_s, h_s, *, hp):
    t = pl.program_id(0)

    @pl.when(t == 0)
    def _():
        c_s[...] = c0_ref[...].astype(jnp.float32)
        h_s[...] = h0_ref[...].astype(jnp.float32)

    wx = wx_ref[...]
    wh = wh_ref[...]                          # (Hp, 4*Hp); padded rows are zero
    x = xs_ref[0].astype(wx.dtype)            # (B, D)
    h = h_s[...].astype(wh.dtype)             # (B, Hp), padded lanes stay zero

    gates = (jnp.dot(x, wx, preferred_element_type=jnp.float32)
             + jnp.dot(h, wh, preferred_element_type=jnp.float32)
             + b_ref[...].astype(jnp.float32))

    i_g = _sigmoid(gates[:, 0 * hp:1 * hp])
    f_g = _sigmoid(gates[:, 1 * hp:2 * hp])
    c_c = jnp.tanh(gates[:, 2 * hp:3 * hp])
    o_g = _sigmoid(gates[:, 3 * hp:4 * hp])

    c_new = f_g * c_s[...] + i_g * c_c
    h_new = o_g * jnp.tanh(c_new)
    c_s[...] = c_new
    h_s[...] = h_new
    hs_ref[0] = h_new.astype(hs_ref.dtype)

    @pl.when(t == pl.num_programs(0) - 1)
    def _():
        c_fin_ref[...] = c_new.astype(c_fin_ref.dtype)


def lstm_sequence(xs, c0, h0, wx, wh, b):
    """Run the LSTM cell over xs:(T, B, D). Returns (hs:(T,B,H), c_T, h_T)."""
    T, B, D = xs.shape
    H = h0.shape[1]
    Hp4 = wx.shape[1]
    Hp = Hp4 // 4
    assert wx.shape == (D, Hp4) and wh.shape == (Hp, Hp4)

    # Pad the carried state ONCE for the whole sequence (padded lanes stay 0).
    if Hp != H:
        c0 = jnp.pad(c0, ((0, 0), (0, Hp - H)))
        h0 = jnp.pad(h0, ((0, 0), (0, Hp - H)))

    w_item = jnp.dtype(wx.dtype).itemsize
    x_item = jnp.dtype(xs.dtype).itemsize

    def vmem_limit(single_buffer):
        wbuf = 1 if single_buffer else 2
        resident = (wbuf * (wx.size + wh.size) * w_item + 2 * b.size * 4
                    + 2 * B * Hp * 4          # c0/h0 resident blocks
                    + 2 * B * Hp * 4          # carried-state scratch
                    + B * Hp * 4)             # final-c output block
        per_step = B * D * x_item + B * Hp * 4     # x_t in, h_t out
        temps = 2 * B * 4 * Hp * 4 + B * (D + Hp) * w_item
        return _vmem_limit_bytes(resident + 2 * per_step + temps)

    kernel = functools.partial(_lstm_seq_kernel, hp=Hp)

    def run(single_buffer_weights):
        wspec = lambda shape: _const_spec(shape, single_buffer_weights)
        return pl.pallas_call(
            kernel,
            out_shape=(
                jax.ShapeDtypeStruct((T, B, Hp), h0.dtype),   # h_t stream
                jax.ShapeDtypeStruct((B, Hp), c0.dtype),      # final c
            ),
            grid=(T,),
            in_specs=[
                pl.BlockSpec((1, B, D), lambda t: (t, 0, 0)),  # x_t
                wspec((B, Hp)),                                # c0 (read at t=0)
                wspec((B, Hp)),                                # h0 (read at t=0)
                wspec((D, Hp4)),                               # Wx resident
                wspec((Hp, Hp4)),                              # Wh resident
                wspec((1, Hp4)),                               # b  resident
            ],
            out_specs=(
                pl.BlockSpec((1, B, Hp), lambda t: (t, 0, 0)),
                pl.BlockSpec((B, Hp), lambda t: (0, 0)),
            ),
            scratch_shapes=[pltpu.VMEM((B, Hp), jnp.float32),   # carried c
                            pltpu.VMEM((B, Hp), jnp.float32)],  # carried h
            compiler_params=pltpu.CompilerParams(
                dimension_semantics=("arbitrary",),
                vmem_limit_bytes=vmem_limit(single_buffer_weights),
            ),
        )(xs, c0, h0, wx, wh, b)

    hs, c_T = _run_maybe_single_buffered(run)
    h_T = hs[-1]
    if Hp != H:
        hs, c_T, h_T = hs[:, :, :H], c_T[:, :H], h_T[:, :H]
    return hs, c_T, h_T


# ---------------------------------------------------------------------------
# Parameter packing / init / pure-JAX reference
# ---------------------------------------------------------------------------

def pack_params(gate_params, input_dim, hidden_dim, weight_dtype=jnp.float32):
    """Fuse + per-gate lane-pad the 8 Linear layers into Wx:(D,4Hp), Wh:(Hp,4Hp),
    b:(1,4Hp).  Done once at init; padded rows/columns are zero."""
    D, H = input_dim, hidden_dim
    Hp = _round_up(H, 128)
    wx = jnp.zeros((D, 4 * Hp), dtype=jnp.float32)
    wh = jnp.zeros((Hp, 4 * Hp), dtype=jnp.float32)
    b = jnp.zeros((1, 4 * Hp), dtype=jnp.float32)
    for g, (wg, ug, bg) in enumerate(gate_params):   # gate order: i, f, c, o
        col = g * Hp
        wx = wx.at[:, col:col + H].set(wg)
        wh = wh.at[:H, col:col + H].set(ug)
        b = b.at[0, col:col + H].set(bg)
    # Bias stays f32 (added after the f32-accumulated dots).
    return wx.astype(weight_dtype), wh.astype(weight_dtype), b


def init_params(key, input_dim, hidden_dim, weight_dtype=jnp.float32):
    """nn.Linear-style init (uniform +-1/sqrt(fan_in)) for all 8 gate layers."""
    keys = jax.random.split(key, 16)
    kx = 1.0 / jnp.sqrt(input_dim)
    kh = 1.0 / jnp.sqrt(hidden_dim)

    gate_params = []
    for g in range(4):  # gate order: i, f, c, o
        wg = jax.random.uniform(keys[4 * g + 0], (input_dim, hidden_dim),
                                minval=-kx, maxval=kx, dtype=jnp.float32)
        bwg = jax.random.uniform(keys[4 * g + 1], (hidden_dim,),
                                 minval=-kx, maxval=kx, dtype=jnp.float32)
        ug = jax.random.uniform(keys[4 * g + 2], (hidden_dim, hidden_dim),
                                minval=-kh, maxval=kh, dtype=jnp.float32)
        bug = jax.random.uniform(keys[4 * g + 3], (hidden_dim,),
                                 minval=-kh, maxval=kh, dtype=jnp.float32)
        gate_params.append((wg, ug, bwg + bug))

    wx, wh, b = pack_params(gate_params, input_dim, hidden_dim, weight_dtype)
    return wx, wh, b, gate_params


def lstm_cell_ref(x, c, h, gate_params):
    """Pure-JAX mirror of the PyTorch LSTMCell.forward."""
    (wi, ui, bi), (wf, uf, bf), (wc, uc, bc), (wo, uo, bo) = gate_params
    i = jax.nn.sigmoid(x @ wi + h @ ui + bi)
    f = jax.nn.sigmoid(x @ wf + h @ uf + bf)
    o = jax.nn.sigmoid(x @ wo + h @ uo + bo)
    cc = jnp.tanh(x @ wc + h @ uc + bc)
    c_out = f * c + i * cc
    h_out = o * jnp.tanh(c_out)
    return c_out, h_out


if __name__ == "__main__":
    input_dim, hidden_dim, output_dim = 16, 32, 32  # output_dim unused in forward
    batch, seq_len = 8, 6

    key = jax.random.PRNGKey(0)
    k_x, k_c, k_h, k_p, k_xs = jax.random.split(key, 5)
    x = jax.random.normal(k_x, (batch, input_dim), dtype=jnp.float32)
    c = jax.random.normal(k_c, (batch, hidden_dim), dtype=jnp.float32)
    h = jax.random.normal(k_h, (batch, hidden_dim), dtype=jnp.float32)

    # TODO(synk): for v6e/v7x throughput at large H, pass weight_dtype=jnp.bfloat16
    # and keep x/h in bf16 (kernel keeps f32 accumulation + f32 gating); f32 kept
    # here for the strict numerical check against the reference.
    wx, wh, b, gate_params = init_params(k_p, input_dim, hidden_dim)

    # --- single-step LSTMCell.forward (module semantics) ---
    c_out, h_out = lstm_cell(x, c, h, wx, wh, b)
    jax.block_until_ready((c_out, h_out))

    c_ref, h_ref = lstm_cell_ref(x, c, h, gate_params)
    assert c_out.shape == (batch, hidden_dim) and h_out.shape == (batch, hidden_dim)
    assert jnp.allclose(c_out, c_ref, atol=1e-5, rtol=1e-5), \
        float(jnp.max(jnp.abs(c_out - c_ref)))
    assert jnp.allclose(h_out, h_ref, atol=1e-5, rtol=1e-5), \
        float(jnp.max(jnp.abs(h_out - h_ref)))

    # --- in-kernel time loop (weights DMA'd once for the whole sequence) ---
    xs = jax.random.normal(k_xs, (seq_len, batch, input_dim), dtype=jnp.float32)
    hs, c_T, h_T = lstm_sequence(xs, c, h, wx, wh, b)
    jax.block_until_ready((hs, c_T, h_T))

    c_r, h_r = c, h
    hs_r = []
    for t in range(seq_len):
        c_r, h_r = lstm_cell_ref(xs[t], c_r, h_r, gate_params)
        hs_r.append(h_r)
    hs_r = jnp.stack(hs_r)
    assert hs.shape == (seq_len, batch, hidden_dim)
    assert jnp.allclose(hs, hs_r, atol=1e-4, rtol=1e-4), \
        float(jnp.max(jnp.abs(hs - hs_r)))
    assert jnp.allclose(c_T, c_r, atol=1e-4, rtol=1e-4), \
        float(jnp.max(jnp.abs(c_T - c_r)))
    assert jnp.allclose(h_T, h_r, atol=1e-4, rtol=1e-4), \
        float(jnp.max(jnp.abs(h_T - h_r)))

    print("KERNEL_OK")
</pallas_src>

<mosaic_0001>
module attributes {stable_mosaic.version = 11 : i64} {
  func.func @_lstm_cell_kernel(%arg0: i32, %arg1: memref<8x16xf32, #tpu.memory_space<vmem>>, %arg2: memref<8x32xf32, #tpu.memory_space<vmem>>, %arg3: memref<8x128xf32, #tpu.memory_space<vmem>>, %arg4: memref<16x512xf32, #tpu.memory_space<vmem>>, %arg5: memref<128x512xf32, #tpu.memory_space<vmem>>, %arg6: memref<1x512xf32, #tpu.memory_space<vmem>>, %arg7: memref<8x128xf32, #tpu.memory_space<vmem>>, %arg8: memref<8x128xf32, #tpu.memory_space<vmem>>) attributes {dimension_semantics = [#tpu.dimension_semantics<parallel>], iteration_bounds = array<i64: 1>, scalar_prefetch = 0 : i64, scratch_operands = 0 : i64, tpu.core_type = #tpu.core_type<tc>, window_params = [{transform_indices = @transform_0, window_bounds = array<i64: 8, 16>}, {transform_indices = @transform_1, window_bounds = array<i64: 8, 32>}, {transform_indices = @transform_2, window_bounds = array<i64: 8, 128>}, {pipeline_mode = #tpu.pipeline_mode<synchronous>, transform_indices = @transform_3, window_bounds = array<i64: 16, 512>}, {pipeline_mode = #tpu.pipeline_mode<synchronous>, transform_indices = @transform_4, window_bounds = array<i64: 128, 512>}, {pipeline_mode = #tpu.pipeline_mode<synchronous>, transform_indices = @transform_5, window_bounds = array<i64: 1, 512>}, {transform_indices = @transform_6, window_bounds = array<i64: 8, 128>}, {transform_indices = @transform_7, window_bounds = array<i64: 8, 128>}]} {
    %c0 = arith.constant 0 : index
    %c0_0 = arith.constant 0 : index
    %0 = vector.load %arg4[%c0, %c0_0] : memref<16x512xf32, #tpu.memory_space<vmem>>, vector<16x512xf32>
    %c0_1 = arith.constant 0 : index
    %c0_2 = arith.constant 0 : index
    %1 = vector.load %arg5[%c0_1, %c0_2] : memref<128x512xf32, #tpu.memory_space<vmem>>, vector<32x512xf32>
    %c0_3 = arith.constant 0 : index
    %c0_4 = arith.constant 0 : index
    %2 = vector.load %arg1[%c0_3, %c0_4] : memref<8x16xf32, #tpu.memory_space<vmem>>, vector<8x16xf32>
    %c0_5 = arith.constant 0 : index
    %c0_6 = arith.constant 0 : index
    %3 = vector.load %arg2[%c0_5, %c0_6] : memref<8x32xf32, #tpu.memory_space<vmem>>, vector<8x32xf32>
    %cst = arith.constant dense<0.000000e+00> : vector<8x512xf32>
    %4 = tpu.matmul %2, %0, %cst {dimension_numbers = #tpu.dot_dimension_numbers<[1], [0], [0], [1], [0, 0, 1, 1], [], []>} : vector<8x16xf32>, vector<16x512xf32>, vector<8x512xf32> -> vector<8x512xf32>
    %cst_7 = arith.constant dense<0.000000e+00> : vector<8x512xf32>
    %5 = tpu.matmul %3, %1, %cst_7 {dimension_numbers = #tpu.dot_dimension_numbers<[1], [0], [0], [1], [0, 0, 1, 1], [], []>} : vector<8x32xf32>, vector<32x512xf32>, vector<8x512xf32> -> vector<8x512xf32>
    %6 = arith.addf %4, %5 : vector<8x512xf32>
    %c0_8 = arith.constant 0 : index
    %c0_9 = arith.constant 0 : index
    %7 = vector.load %arg6[%c0_8, %c0_9] : memref<1x512xf32, #tpu.memory_space<vmem>>, vector<1x512xf32>
    %8 = vector.broadcast %7 : vector<1x512xf32> to vector<8x512xf32>
    %9 = arith.addf %6, %8 : vector<8x512xf32>
    %10 = vector.extract_strided_slice %9 {offsets = [0, 0], sizes = [8, 128], strides = [1, 1]} : vector<8x512xf32> to vector<8x128xf32>
    %cst_10 = arith.constant 5.000000e-01 : f32
    %11 = vector.broadcast %cst_10 : f32 to vector<8x128xf32>
    %12 = arith.mulf %11, %10 : vector<8x128xf32>
    %13 = math.tanh %12 : vector<8x128xf32>
    %cst_11 = arith.constant 5.000000e-01 : f32
    %14 = vector.broadcast %cst_11 : f32 to vector<8x128xf32>
    %15 = arith.mulf %14, %13 : vector<8x128xf32>
    %cst_12 = arith.constant 5.000000e-01 : f32
    %16 = vector.broadcast %cst_12 : f32 to vector<8x128xf32>
    %17 = arith.addf %15, %16 : vector<8x128xf32>
    %18 = vector.extract_strided_slice %9 {offsets = [0, 128], sizes = [8, 128], strides = [1, 1]} : vector<8x512xf32> to vector<8x128xf32>
    %cst_13 = arith.constant 5.000000e-01 : f32
    %19 = vector.broadcast %cst_13 : f32 to vector<8x128xf32>
    %20 = arith.mulf %19, %18 : vector<8x128xf32>
    %21 = math.tanh %20 : vector<8x128xf32>
    %cst_14 = arith.constant 5.000000e-01 : f32
    %22 = vector.broadcast %cst_14 : f32 to vector<8x128xf32>
    %23 = arith.mulf %22, %21 : vector<8x128xf32>
    %cst_15 = arith.constant 5.000000e-01 : f32
    %24 = vector.broadcast %cst_15 : f32 to vector<8x128xf32>
    %25 = arith.addf %23, %24 : vector<8x128xf32>
    %26 = vector.extract_strided_slice %9 {offsets = [0, 256], sizes = [8, 128], strides = [1, 1]} : vector<8x512xf32> to vector<8x128xf32>
    %27 = math.tanh %26 : vector<8x128xf32>
    %28 = vector.extract_strided_slice %9 {offsets = [0, 384], sizes = [8, 128], strides = [1, 1]} : vector<8x512xf32> to vector<8x128xf32>
    %cst_16 = arith.constant 5.000000e-01 : f32
    %29 = vector.broadcast %cst_16 : f32 to vector<8x128xf32>
    %30 = arith.mulf %29, %28 : vector<8x128xf32>
    %31 = math.tanh %30 : vector<8x128xf32>
    %cst_17 = arith.constant 5.000000e-01 : f32
    %32 = vector.broadcast %cst_17 : f32 to vector<8x128xf32>
    %33 = arith.mulf %32, %31 : vector<8x128xf32>
    %cst_18 = arith.constant 5.000000e-01 : f32
    %34 = vector.broadcast %cst_18 : f32 to vector<8x128xf32>
    %35 = arith.addf %33, %34 : vector<8x128xf32>
    %c0_19 = arith.constant 0 : index
    %c0_20 = arith.constant 0 : index
    %36 = vector.load %arg3[%c0_19, %c0_20] : memref<8x128xf32, #tpu.memory_space<vmem>>, vector<8x128xf32>
    %37 = arith.mulf %25, %36 : vector<8x128xf32>
    %38 = arith.mulf %17, %27 : vector<8x128xf32>
    %39 = arith.addf %37, %38 : vector<8x128xf32>
    %c0_21 = arith.constant 0 : index
    %c0_22 = arith.constant 0 : index
    %40 = vector.load %arg7[%c0_21, %c0_22] : memref<8x128xf32, #tpu.memory_space<vmem>>, vector<8x128xf32>
    tpu.vector_store %arg7[%c0_21, %c0_22], %39 {strides = array<i32>} : memref<8x128xf32, #tpu.memory_space<vmem>>, vector<8x128xf32>,
    %41 = math.tanh %39 : vector<8x128xf32>
    %42 = arith.mulf %35, %41 : vector<8x128xf32>
    %c0_23 = arith.constant 0 : index
    %c0_24 = arith.constant 0 : index
    %43 = vector.load %arg8[%c0_23, %c0_24] : memref<8x128xf32, #tpu.memory_space<vmem>>, vector<8x128xf32>
    tpu.vector_store %arg8[%c0_23, %c0_24], %42 {strides = array<i32>} : memref<8x128xf32, #tpu.memory_space<vmem>>, vector<8x128xf32>,
    return
  }
  func.func @transform_0(%arg0: i32) -> (i32, i32) {
    %c0_i32 = arith.constant 0 : i32
    %c0_i32_0 = arith.constant 0 : i32
    return %arg0, %c0_i32 : i32, i32
  }
  func.func @transform_1(%arg0: i32) -> (i32, i32) {
    %c0_i32 = arith.constant 0 : i32
    %c0_i32_0 = arith.constant 0 : i32
    return %arg0, %c0_i32 : i32, i32
  }
  func.func @transform_2(%arg0: i32) -> (i32, i32) {
    %c0_i32 = arith.constant 0 : i32
    %c0_i32_0 = arith.constant 0 : i32
    return %arg0, %c0_i32 : i32, i32
  }
  func.func @transform_3(%arg0: i32) -> (i32, i32) {
    %c0_i32 = arith.constant 0 : i32
    %c0_i32_0 = arith.constant 0 : i32
    %c0_i32_1 = arith.constant 0 : i32
    return %c0_i32, %c0_i32_0 : i32, i32
  }
  func.func @transform_4(%arg0: i32) -> (i32, i32) {
    %c0_i32 = arith.constant 0 : i32
    %c0_i32_0 = arith.constant 0 : i32
    %c0_i32_1 = arith.constant 0 : i32
    return %c0_i32, %c0_i32_0 : i32, i32
  }
  func.func @transform_5(%arg0: i32) -> (i32, i32) {
    %c0_i32 = arith.constant 0 : i32
    %c0_i32_0 = arith.constant 0 : i32
    %c0_i32_1 = arith.constant 0 : i32
    return %c0_i32, %c0_i32_0 : i32, i32
  }
  func.func @transform_6(%arg0: i32) -> (i32, i32) {
    %c0_i32 = arith.constant 0 : i32
    %c0_i32_0 = arith.constant 0 : i32
    return %arg0, %c0_i32 : i32, i32
  }
  func.func @transform_7(%arg0: i32) -> (i32, i32) {
    %c0_i32 = arith.constant 0 : i32
    %c0_i32_0 = arith.constant 0 : i32
    return %arg0, %c0_i32 : i32, i32
  }
}

module attributes {stable_mosaic.version = 11 : i64} {
  func.func @_lstm_cell_kernel(%arg0: i32, %arg1: memref<8x16xf32, #tpu.memory_space<vmem>>, %arg2: memref<8x32xf32, #tpu.memory_space<vmem>>, %arg3: memref<8x128xf32, #tpu.memory_space<vmem>>, %arg4: memref<16x512xf32, #tpu.memory_space<vmem>>, %arg5: memref<128x512xf32, #tpu.memory_space<vmem>>, %arg6: memref<1x512xf32, #tpu.memory_space<vmem>>, %arg7: memref<8x128xf32, #tpu.memory_space<vmem>>, %arg8: memref<8x128xf32, #tpu.memory_space<vmem>>) attributes {dimension_semantics = [#tpu.dimension_semantics<parallel>], iteration_bounds = array<i64: 1>, scalar_prefetch = 0 : i64, scratch_operands = 0 : i64, tpu.core_type = #tpu.core_type<tc>, window_params = [{transform_indices = @transform_0, window_bounds = array<i64: 8, 16>}, {transform_indices = @transform_1, window_bounds = array<i64: 8, 32>}, {transform_indices = @transform_2, window_bounds = array<i64: 8, 128>}, {pipeline_mode = #tpu.pipeline_mode<synchronous>, transform_indices = @transform_3, window_bounds = array<i64: 16, 512>}, {pipeline_mode = #tpu.pipeline_mode<synchronous>, transform_indices = @transform_4, window_bounds = array<i64: 128, 512>}, {pipeline_mode = #tpu.pipeline_mode<synchronous>, transform_indices = @transform_5, window_bounds = array<i64: 1, 512>}, {transform_indices = @transform_6, window_bounds = array<i64: 8, 128>}, {transform_indices = @transform_7, window_bounds = array<i64: 8, 128>}]} {
    %c0 = arith.constant 0 : index
    %c0_0 = arith.constant 0 : index
    %0 = vector.load %arg4[%c0, %c0_0] : memref<16x512xf32, #tpu.memory_space<vmem>>, vector<16x512xf32>
    %c0_1 = arith.constant 0 : index
    %c0_2 = arith.constant 0 : index
    %1 = vector.load %arg5[%c0_1, %c0_2] : memref<128x512xf32, #tpu.memory_space<vmem>>, vector<32x512xf32>
    %c0_3 = arith.constant 0 : index
    %c0_4 = arith.constant 0 : index
    %2 = vector.load %arg1[%c0_3, %c0_4] : memref<8x16xf32, #tpu.memory_space<vmem>>, vector<8x16xf32>
    %c0_5 = arith.constant 0 : index
    %c0_6 = arith.constant 0 : index
    %3 = vector.load %arg2[%c0_5, %c0_6] : memref<8x32xf32, #tpu.memory_space<vmem>>, vector<8x32xf32>
    %cst = arith.constant dense<0.000000e+00> : vector<8x512xf32>
    %4 = tpu.matmul %2, %0, %cst {dimension_numbers = #tpu.dot_dimension_numbers<[1], [0], [0], [1], [0, 0, 1, 1], [], []>} : vector<8x16xf32>, vector<16x512xf32>, vector<8x512xf32> -> vector<8x512xf32>
    %cst_7 = arith.constant dense<0.000000e+00> : vector<8x512xf32>
    %5 = tpu.matmul %3, %1, %cst_7 {dimension_numbers = #tpu.dot_dimension_numbers<[1], [0], [0], [1], [0, 0, 1, 1], [], []>} : vector<8x32xf32>, vector<32x512xf32>, vector<8x512xf32> -> vector<8x512xf32>
    %6 = arith.addf %4, %5 : vector<8x512xf32>
    %c0_8 = arith.constant 0 : index
    %c0_9 = arith.constant 0 : index
    %7 = vector.load %arg6[%c0_8, %c0_9] : memref<1x512xf32, #tpu.memory_space<vmem>>, vector<1x512xf32>
    %8 = vector.broadcast %7 : vector<1x512xf32> to vector<8x512xf32>
    %9 = arith.addf %6, %8 : vector<8x512xf32>
    %10 = vector.extract_strided_slice %9 {offsets = [0, 0], sizes = [8, 128], strides = [1, 1]} : vector<8x512xf32> to vector<8x128xf32>
    %cst_10 = arith.constant 5.000000e-01 : f32
    %11 = vector.broadcast %cst_10 : f32 to vector<8x128xf32>
    %12 = arith.mulf %11, %10 : vector<8x128xf32>
    %13 = math.tanh %12 : vector<8x128xf32>
    %cst_11 = arith.constant 5.000000e-01 : f32
    %14 = vector.broadcast %cst_11 : f32 to vector<8x128xf32>
    %15 = arith.mulf %14, %13 : vector<8x128xf32>
    %cst_12 = arith.constant 5.000000e-01 : f32
    %16 = vector.broadcast %cst_12 : f32 to vector<8x128xf32>
    %17 = arith.addf %15, %16 : vector<8x128xf32>
    %18 = vector.extract_strided_slice %9 {offsets = [0, 128], sizes = [8, 128], strides = [1, 1]} : vector<8x512xf32> to vector<8x128xf32>
    %cst_13 = arith.constant 5.000000e-01 : f32
    %19 = vector.broadcast %cst_13 : f32 to vector<8x128xf32>
    %20 = arith.mulf %19, %18 : vector<8x128xf32>
    %21 = math.tanh %20 : vector<8x128xf32>
    %cst_14 = arith.constant 5.000000e-01 : f32
    %22 = vector.broadcast %cst_14 : f32 to vector<8x128xf32>
    %23 = arith.mulf %22, %21 : vector<8x128xf32>
    %cst_15 = arith.constant 5.000000e-01 : f32
    %24 = vector.broadcast %cst_15 : f32 to vector<8x128xf32>
    %25 = arith.addf %23, %24 : vector<8x128xf32>
    %26 = vector.extract_strided_slice %9 {offsets = [0, 256], sizes = [8, 128], strides = [1, 1]} : vector<8x512xf32> to vector<8x128xf32>
    %27 = math.tanh %26 : vector<8x128xf32>
    %28 = vector.extract_strided_slice %9 {offsets = [0, 384], sizes = [8, 128], strides = [1, 1]} : vector<8x512xf32> to vector<8x128xf32>
    %cst_16 = arith.constant 5.000000e-01 : f32
    %29 = vector.broadcast %cst_16 : f32 to vector<8x128xf32>
    %30 = arith.mulf %29, %28 : vector<8x128xf32>
    %31 = math.tanh %30 : vector<8x128xf32>
    %cst_17 = arith.constant 5.000000e-01 : f32
    %32 = vector.broadcast %cst_17 : f32 to vector<8x128xf32>
    %33 = arith.mulf %32, %31 : vector<8x128xf32>
    %cst_18 = arith.constant 5.000000e-01 : f32
    %34 = vector.broadcast %cst_18 : f32 to vector<8x128xf32>
    %35 = arith.addf %33, %34 : vector<8x128xf32>
    %c0_19 = arith.constant 0 : index
    %c0_20 = arith.constant 0 : index
    %36 = vector.load %arg3[%c0_19, %c0_20] : memref<8x128xf32, #tpu.memory_space<vmem>>, vector<8x128xf32>
    %37 = arith.mulf %25, %36 : vector<8x128xf32>
    %38 = arith.mulf %17, %27 : vector<8x128xf32>
    %39 = arith.addf %37, %38 : vector<8x128xf32>
    %c0_21 = arith.constant 0 : index
    %c0_22 = arith.constant 0 : index
    %40 = vector.load %arg7[%c0_21, %c0_22] : memref<8x128xf32, #tpu.memory_space<vmem>>, vector<8x128xf32>
    tpu.vector_store %arg7[%c0_21, %c0_22], %39 {strides = array<i32>} : memref<8x128xf32, #tpu.memory_space<vmem>>, vector<8x128xf32>,
    %41 = math.tanh %39 : vector<8x128xf32>
    %42 = arith.mulf %35, %41 : vector<8x128xf32>
    %c0_23 = arith.constant 0 : index
    %c0_24 = arith.constant 0 : index
    %43 = vector.load %arg8[%c0_23, %c0_24] : memref<8x128xf32, #tpu.memory_space<vmem>>, vector<8x128xf32>
    tpu.vector_store %arg8[%c0_23, %c0_24], %42 {strides = array<i32>} : memref<8x128xf32, #tpu.memory_space<vmem>>, vector<8x128xf32>,
    return
  }
  func.func @transform_0(%arg0: i32) -> (i32, i32) {
    %c0_i32 = arith.constant 0 : i32
    %c0_i32_0 = arith.constant 0 : i32
    return %arg0, %c0_i32 : i32, i32
  }
  func.func @transform_1(%arg0: i32) -> (i32, i32) {
    %c0_i32 = arith.constant 0 : i32
    %c0_i32_0 = arith.constant 0 : i32
    return %arg0, %c0_i32 : i32, i32
  }
  func.func @transform_2(%arg0: i32) -> (i32, i32) {
    %c0_i32 = arith.constant 0 : i32
    %c0_i32_0 = arith.constant 0 : i32
    return %arg0, %c0_i32 : i32, i32
  }
  func.func @transform_3(%arg0: i32) -> (i32, i32) {
    %c0_i32 = arith.constant 0 : i32
    %c0_i32_0 = arith.constant 0 : i32
    %c0_i32_1 = arith.constant 0 : i32
    return %c0_i32, %c0_i32_0 : i32, i32
  }
  func.func @transform_4(%arg0: i32) -> (i32, i32) {
    %c0_i32 = arith.constant 0 : i32
    %c0_i32_0 = arith.constant 0 : i32
    %c0_i32_1 = arith.constant 0 : i32
    return %c0_i32, %c0_i32_0 : i32, i32
  }
  func.func @transform_5(%arg0: i32) -> (i32, i32) {
    %c0_i32 = arith.constant 0 : i32
    %c0_i32_0 = arith.constant 0 : i32
    %c0_i32_1 = arith.constant 0 : i32
    return %c0_i32, %c0_i32_0 : i32, i32
  }
  func.func @transform_6(%arg0: i32) -> (i32, i32) {
    %c0_i32 = arith.constant 0 : i32
    %c0_i32_0 = arith.constant 0 : i32
    return %arg0, %c0_i32 : i32, i32
  }
  func.func @transform_7(%arg0: i32) -> (i32, i32) {
    %c0_i32 = arith.constant 0 : i32
    %c0_i32_0 = arith.constant 0 : i32
    return %arg0, %c0_i32 : i32, i32
  }
}

</mosaic_0001>

<bundles_post_ra>
// kernel: tpu_custom_call.1
= control target key start
LH: loop header
LB: loop body
LE: loop exit
PB: predicated region body
PF: predicated region fallthrough
CT: control target
= control target key end

     0   :  { %13 = vsyncpa [#allocation3], 0  ;;  %s851_s0 = inlined_call_operand.hbm [shape: f32[8,16], index: 0, kind: input, shape index: {}]   ;;  %s852_s1 = inlined_call_operand.hbm [shape: f32[8,32], index: 1, kind: input, shape index: {}]   ;;  %s853_s2 = inlined_call_operand.hbm [shape: f32[8,128], index: 2, kind: input, shape index: {}]   ;;  %s854_s3 = inlined_call_operand.hbm [shape: f32[16,512], index: 3, kind: input, shape index: {}]   ;;  %s855_s4 = inlined_call_operand.hbm [shape: f32[128,512], index: 4, kind: input, shape index: {}]   ;;  %s856_s5 = inlined_call_operand.vmem [shape: f32[1,512], index: 5, kind: input, shape index: {}]   ;;  %s857_s6 = inlined_call_operand.hbm [shape: f32[8,128], index: 6, kind: output, shape index: {0}]   ;;  %s858_s7 = inlined_call_operand.hbm [shape: f32[8,128], index: 7, kind: output, shape index: {1}]  }
   0x1   :  { %14 = vsyncpa [#allocation6], 0 }
   0x2   :  { %15 = vsyncpa [#allocation9], 0 }
   0x3   :  { %16 = vsyncpa [#allocation4], 0 }
   0x4   :  { %17 = vsyncpa [#allocation13], 0  ;;  %s701_s24 = smov [#allocation5]   ;;  %s702_s26 = smov [#allocation8]  }
   0x5   :  { %s34_s25 = sshll.u32 %s701_s24, 4  ;;  %s53_s27 = sshll.u32 %s702_s26, 4  ;;  %s35_s25 = int_to_ptr.vmem [resolvable:$true] %s34_s25  ;;  %s751_s27 = int_to_ptr.vmem [resolvable:$true] %s53_s27 }
   0x6   :  { %s537_s30 = scalar_lea.hbm %s852_s1, 128 }
   0x7   :  { %p538_p0 = scmp.ne.s32.totalorder %s852_s1, %s537_s30  ;;  %p541_p1 = scmp.lt.u32.totalorder %s537_s30, %s852_s1 }
   0x9   :  { %p543_p2 = pnand %p541_p1, %p538_p0 }
   0xb   :  { %546 = shalt.err (!%p543_p2)
}
   0xc   :  { %s547_s12 = scalar_lea.vmem %s35_s25, 128  ;;  %p552_p4 = scmp.lt.s32.totalorder %s35_s25, %s35_s25 }
   0xd   :  { %p548_p3 = scmp.ne.s32.totalorder %s35_s25, %s547_s12  ;;  %p553_p5 = scmp.lt.s32.totalorder %s547_s12, %s547_s12 }
   0xf   :  { %p554_p6 = por %p553_p5, %p552_p4 }
  0x11   :  { %p555_p7 = pnand %p554_p6, %p548_p3 }
  0x13   :  { %558 = shalt.err (!%p555_p7)
}
  0x14   :  { %37 = dma.hbm_to_vmem [thread:$0]  %s852_s1, 128, %s35_s25, [#allocation6]  }
  0x15   :  { %s559_s17 = scalar_lea.hbm %s854_s3, 1024 }
  0x16   :  { %p560_p8 = scmp.ne.s32.totalorder %s854_s3, %s559_s17  ;;  %p563_p9 = scmp.lt.u32.totalorder %s559_s17, %s854_s3 }
  0x18   :  { %p565_p10 = pnand %p563_p9, %p560_p8 }
  0x1a   :  { %568 = shalt.err (!%p565_p10)
}
  0x1b   :  { %s569_s22 = scalar_lea.vmem %s751_s27, 1024  ;;  %p574_p12 = scmp.lt.s32.totalorder %s751_s27, %s751_s27 }
  0x1c   :  { %p570_p11 = scmp.ne.s32.totalorder %s751_s27, %s569_s22  ;;  %p575_p13 = scmp.lt.s32.totalorder %s569_s22, %s569_s22 }
  0x1e   :  { %p576_p0 = por %p575_p13, %p574_p12 }
  0x20   :  { %p577_p1 = pnand %p576_p0, %p570_p11 }
  0x22   :  { %580 = shalt.err (!%p577_p1)
}
  0x23   :  { %s703_s1 = smov 512   ;;  %s704_s23 = smov 32  }
  0x24   :  { %59 = dma.hbm_to_vmem [thread:$0]  %s854_s3, 1024, %s751_s27, [#allocation9], %s703_s1, %s703_s1, %s704_s23  }
  0x25   :  { %s705_s26 = smov [#allocation2]   ;;  %s706_s29 = smov [#allocation7]  }
  0x26   :  { %s24_s28 = sshll.u32 %s705_s26, 4  ;;  %s44_s30 = sshll.u32 %s706_s29, 4  ;;  %s25_s28 = int_to_ptr.vmem [resolvable:$true] %s24_s28  ;;  %s45_s30 = int_to_ptr.vmem [resolvable:$true] %s44_s30 }
  0x27   :  { %s581_s10 = scalar_lea.hbm %s851_s0, 128 }
  0x28   :  { %p582_p2 = scmp.ne.s32.totalorder %s851_s0, %s581_s10  ;;  %p585_p3 = scmp.lt.u32.totalorder %s581_s10, %s851_s0 }
  0x2a   :  { %p587_p4 = pnand %p585_p3, %p582_p2 }
  0x2c   :  { %590 = shalt.err (!%p587_p4)
}
  0x2d   :  { %s591_s3 = scalar_lea.vmem %s25_s28, 128  ;;  %p596_p6 = scmp.lt.s32.totalorder %s25_s28, %s25_s28 }
  0x2e   :  { %p592_p5 = scmp.ne.s32.totalorder %s25_s28, %s591_s3  ;;  %p597_p7 = scmp.lt.s32.totalorder %s591_s3, %s591_s3 }
  0x30   :  { %p598_p8 = por %p597_p7, %p596_p6 }
  0x32   :  { %p599_p9 = pnand %p598_p8, %p592_p5 }
  0x34   :  { %602 = shalt.err (!%p599_p9)
}
  0x35   :  { %27 = dma.hbm_to_vmem [thread:$0]  %s851_s0, 128, %s25_s28, [#allocation3]  }
  0x36   :  { %s603_s18 = scalar_lea.hbm %s853_s2, 128 }
  0x37   :  { %p604_p10 = scmp.ne.s32.totalorder %s853_s2, %s603_s18  ;;  %p607_p11 = scmp.lt.u32.totalorder %s603_s18, %s853_s2 }
  0x39   :  { %p609_p12 = pnand %p607_p11, %p604_p10 }
  0x3b   :  { %612 = shalt.err (!%p609_p12)
}
  0x3c   :  { %s613_s24 = scalar_lea.vmem %s45_s30, 128  ;;  %p618_p0 = scmp.lt.s32.totalorder %s45_s30, %s45_s30 }
  0x3d   :  { %p614_p13 = scmp.ne.s32.totalorder %s45_s30, %s613_s24  ;;  %p619_p1 = scmp.lt.s32.totalorder %s613_s24, %s613_s24 }
  0x3f   :  { %p620_p2 = por %p619_p1, %p618_p0 }
  0x41   :  { %p621_p3 = pnand %p620_p2, %p614_p13 }
  0x43   :  { %624 = shalt.err (!%p621_p3)
}
  0x44   :  { %47 = dma.hbm_to_vmem [thread:$0]  %s853_s2, 128, %s45_s30, [#allocation6]  }
  0x45   :  { %s707_s26 = smov [#allocation10]   ;;  %s625_s9 = scalar_lea.hbm %s855_s4, 8192 }
  0x46   :  { %s65_s28 = sshll.u32 %s707_s26, 4  ;;  %p626_p4 = scmp.ne.s32.totalorder %s855_s4, %s625_s9  ;;  %s66_s28 = int_to_ptr.vmem [resolvable:$true] %s65_s28 }
  0x47   :  { %p629_p5 = scmp.lt.u32.totalorder %s625_s9, %s855_s4 }
  0x49   :  { %p631_p6 = pnand %p629_p5, %p626_p4 }
  0x4b   :  { %634 = shalt.err (!%p631_p6)
}
  0x4c   :  { %s635_s14 = scalar_lea.vmem %s66_s28, 8192  ;;  %p640_p8 = scmp.lt.s32.totalorder %s66_s28, %s66_s28 }
  0x4d   :  { %p636_p7 = scmp.ne.s32.totalorder %s66_s28, %s635_s14  ;;  %p641_p9 = scmp.lt.s32.totalorder %s635_s14, %s635_s14 }
  0x4f   :  { %p642_p10 = por %p641_p9, %p640_p8 }
  0x51   :  { %p643_p11 = pnand %p642_p10, %p636_p7 }
  0x53   :  { %646 = shalt.err (!%p643_p11)
}
  0x54   :  { %71 = dma.hbm_to_vmem [thread:$0]  %s855_s4, 8192, %s66_s28, [#allocation9], %s703_s1, %s703_s1, %s704_s23  }
  0x55   :  { %691 = dma.done.wait [#allocation3], 128  }
  0x56   :  { %692 = vsyncadd [#allocation3], 4294967168 }
  0x57   :  { %693 = dma.done.wait [#allocation6], 256  }
  0x58   :  { %694 = vsyncadd [#allocation6], 4294967040 }
  0x59   :  { %695 = dma.done.wait [#allocation9], 9216  }
  0x5a   :  { %696 = vsyncadd [#allocation9], 4294958080  ;;  %v708_v0 = vmov 0.0   ;;  %v98_v1 = vld [vmem:[#allocation10 + $0x8] sm:$0xff]  ;;  %v100_v3 = vld [vmem:[#allocation10 + $0x18] sm:$0xff]  ;;  %vm115_vm0 = vcmask 261120   ;;  %v409_v39 = vlaneseq }
  0x5b   :  { %183 = vmatprep.mubr.f32.mxu0 %v708_v0  ;;  %254 = vmatprep.mubr.f32.mxu1 %v708_v0  ;;  %v102_v2 = vld [vmem:[#allocation10 + $0x28] sm:$0xff]  ;;  %v104_v5 = vld [vmem:[#allocation10 + $0x38] sm:$0xff]  ;;  %v97_v6 = vld [vmem:[#allocation10] sm:$0xff]  ;;  %vm261_vm1 = vcmask 130048  }
  0x5c   :  { %v489_v4 = vpack.c.bf16 %v102_v2, %v98_v1  ;;  %v101_v7 = vld [vmem:[#allocation10 + $0x20] sm:$0xff]  ;;  %v497_v8 = vpack.c.bf16 %v104_v5, %v100_v3  ;;  %v99_v10 = vld [vmem:[#allocation10 + $0x10] sm:$0xff]  ;;  %v106_v12 = vld [vmem:[#allocation10 + $0x48] sm:$0xff]  ;;  %v410_v40 = vshrl.u32 %v409_v39, 7 }
  0x5d   :  { %v491_v9 = vpack.c.bf16 %v101_v7, %v97_v6  ;;  %v103_v11 = vld [vmem:[#allocation10 + $0x30] sm:$0xff]  ;;  %v110_v14 = vld [vmem:[#allocation10 + $0x68] sm:$0xff]  ;;  %v108_v15 = vld [vmem:[#allocation10 + $0x58] sm:$0xff] }
  0x5e   :  { %490 = vmatprep.subr.bf16.mxu0 %v489_v4  ;;  %v499_v13 = vpack.c.bf16 %v103_v11, %v99_v10  ;;  %v112_v16 = vld [vmem:[#allocation10 + $0x78] sm:$0xff]  ;;  %498 = vmatprep.subr.bf16.mxu1 %v497_v8  ;;  %v493_v17 = vpack.c.bf16 %v110_v14, %v106_v12  ;;  %v105_v19 = vld [vmem:[#allocation10 + $0x40] sm:$0xff]  ;;  %v107_v21 = vld [vmem:[#allocation10 + $0x50] sm:$0xff]  ;;  %v411_v41 = vsub.s32 0, %v410_v40  ;;  %v415_v43 = vsub.s32 1, %v410_v40 }
  0x5f   :  { %492 = vmatpush1.bf16.msra.mxu0 %v491_v9  ;;  %v501_v18 = vpack.c.bf16 %v112_v16, %v108_v15  ;;  %v109_v20 = vld [vmem:[#allocation10 + $0x60] sm:$0xff]  ;;  %v111_v23 = vld [vmem:[#allocation10 + $0x70] sm:$0xff]  ;;  %v90_v24 = vld [vmem:[#allocation8 + $0x8] sm:$0xff]  ;;  %v419_v45 = vsub.s32 2, %v410_v40  ;;  %v423_v52 = vsub.s32 3, %v410_v40 }
  0x60   :  { %500 = vmatpush1.bf16.msra.mxu1 %v499_v13  ;;  %v495_v22 = vpack.c.bf16 %v109_v20, %v105_v19  ;;  %494 = vmatprep.subr.bf16.mxu0 %v493_v17  ;;  %v503_v25 = vpack.c.bf16 %v111_v23, %v107_v21  ;;  %v94_v26 = vld [vmem:[#allocation8 + $0x28] sm:$0xff]  ;;  %v89_v27 = vld [vmem:[#allocation8] sm:$0xff]  ;;  %v92_v30 = vld [vmem:[#allocation8 + $0x18] sm:$0xff] }
  0x61   :  { %502 = vmatprep.subr.bf16.mxu1 %v501_v18  ;;  %v93_v28 = vld [vmem:[#allocation8 + $0x20] sm:$0xff]  ;;  %v505_v29 = vpack.c.bf16 %v94_v26, %v90_v24  ;;  %v96_v31 = vld [vmem:[#allocation8 + $0x38] sm:$0xff]  ;;  %v91_v32 = vld [vmem:[#allocation8 + $0x10] sm:$0xff] }
  0x62   :  { %v114_v33 = vld [vmem:[#allocation5] sm:$0xff]  ;;  %v507_v34 = vpack.c.bf16 %v93_v28, %v89_v27  ;;  %v509_v35 = vpack.c.bf16 %v96_v31, %v92_v30  ;;  %v113_v38 = vld [vmem:[#allocation2] sm:$0xff]  ;;  %v446_v2 = vld [vmem:[#allocation7] sm:$0xff] }
  0x63   :  { %496 = vmatpush1.bf16.msra.mxu0 %v495_v22  ;;  %v95_v36 = vld [vmem:[#allocation8 + $0x30] sm:$0xff]  ;;  %v407_v42 = vld [vmem:[%s856_s5] sm:$0xf]  ;;  %s709_s5 = smov [#allocation11]  }
  0x64   :  { %504 = vmatpush1.bf16.msra.mxu1 %v503_v25  ;;  %506 = vmatprep.subr.bf16.mxu0 %v505_v29  ;;  %v511_v37 = vpack.c.bf16 %v95_v36, %v91_v32  ;;  %v412_v44 = vrot.slane %v407_v42, %v411_v41  ;;  %v416_v46 = vrot.slane %v407_v42, %v415_v43  ;;  %s460_s23 = sshll.u32 %s709_s5, 4  ;;  %s461_s23 = int_to_ptr.vmem [resolvable:$true] %s460_s23 }
  0x65   :  { %510 = vmatprep.subr.bf16.mxu1 %v509_v35  ;;  %v420_v50 = vrot.slane %v407_v42, %v419_v45  ;;  %v424_v58 = vrot.slane %v407_v42, %v423_v52  ;;  %s647_s3 = scalar_lea.vmem %s461_s23, 128  ;;  %p652_p13 = scmp.lt.s32.totalorder %s461_s23, %s461_s23 }
  0x66   :  { %485 = vmatmul.mubr.msk.f32.vlgmr.msra.gmra.mrb[0].mxu0 %vm115_vm0, %v114_v33  ;;  %p648_p12 = scmp.ne.s32.totalorder %s461_s23, %s647_s3  ;;  %p653_p0 = scmp.lt.s32.totalorder %s647_s3, %s647_s3 }
  0x67   :  { %486 = vmatmul.mubr.msk.f32.vlgmr.msra.gmra.mrb[0].mxu1 %vm115_vm0, %v114_v33  ;;  %508 = vmatpush1.bf16.msra.mxu0 %v507_v34 }
  0x68   :  { %512 = vmatpush1.bf16.msra.mxu1 %v511_v37  ;;  %329 = vmatprep.mubr.f32.mxu0 %v708_v0  ;;  %p654_p1 = por %p653_p0, %p652_p13 }
  0x69   :  { %400 = vmatprep.mubr.f32.mxu1 %v708_v0 }
  0x6a   :  { %p655_p2 = pnand %p654_p1, %p648_p12 }
  0x6e   :  { %487 = vmatmul.mubr.msk.f32.vlgmr.msra.gmra.mrb[0].mxu0 %vm261_vm1, %v113_v38 }
  0x6f   :  { %488 = vmatmul.mubr.msk.f32.vlgmr.msra.gmra.mrb[0].mxu1 %vm261_vm1, %v113_v38 }
 0x141   :  { %v331_v47 = vpop.f32.mrb[0].mxu0 }
 0x142   :  { %v429_v48 = vadd.f32 %v412_v44, %v331_v47  ;;  %v402_v49 = vpop.f32.mrb[0].mxu1  ;;  %v333_v51 = vpop.f32.mrb[1].mxu0 }
 0x143   :  { %v430_v53 = vadd.f32 %v416_v46, %v333_v51  ;;  %v404_v54 = vpop.f32.mrb[1].mxu1  ;;  %v431_v57 = vadd.f32 %v420_v50, %v402_v49 }
 0x144   :  { %v433_v55 = vmul.f32 0.5, %v429_v48  ;;  %v432_v59 = vadd.f32 %v424_v58, %v404_v54 }
 0x145   :  { %v437_v56 = vmul.f32 0.5, %v430_v53 }
 0x146   :  { %527 = vtanh.f32 %v433_v55  ;;  %v442_v60 = vmul.f32 0.5, %v432_v59 }
 0x147   :  { %529 = vtanh.f32 %v437_v56 }
 0x148   :  { %531 = vtanh.f32 %v431_v57 }
 0x149   :  { %533 = vtanh.f32 %v442_v60 }
 0x150   :  { %v528_v61 = vpop.eup %527 }
 0x151   :  { %v530_v62 = vpop.eup %529  ;;  %v435_v63 = vmul.f32 0.5, %v528_v61 }
 0x152   :  { %v439_v0 = vmul.f32 0.5, %v530_v62  ;;  %v532_v3 = vpop.eup %531 }
 0x153   :  { %v436_v1 = vadd.f32 0.5, %v435_v63 }
 0x154   :  { %v440_v4 = vadd.f32 0.5, %v439_v0 }
 0x155   :  { %v448_v5 = vmul.f32 %v532_v3, %v436_v1 }
 0x156   :  { %v447_v6 = vmul.f32 %v446_v2, %v440_v4 }
 0x158   :  { %v449_v7 = vadd.f32 %v448_v5, %v447_v6 }
 0x15a   :  { %450 = vst [vmem:[#allocation11] sm:$0xff] %v449_v7  ;;  %535 = vtanh.f32 %v449_v7 }
 0x15b   :  { %658 = shalt.err (!%p655_p2)
}
 0x15c   :  { %s659_s16 = scalar_lea.hbm %s857_s6, 128 }
 0x15d   :  { %p660_p3 = scmp.ne.s32.totalorder %s857_s6, %s659_s16  ;;  %p663_p4 = scmp.lt.u32.totalorder %s659_s16, %s857_s6 }
 0x15f   :  { %p665_p5 = pnand %p663_p4, %p660_p3 }
 0x161   :  { %668 = shalt.err (!%p665_p5)
}
 0x162   :  { %463 = dma.vmem_to_hbm [thread:$0]  %s461_s23, 128, %s857_s6, [#allocation4]   ;;  %v534_v8 = vpop.eup %533 }
 0x163   :  { %v444_v9 = vmul.f32 0.5, %v534_v8  ;;  %s710_s24 = smov [#allocation12]  }
 0x164   :  { %s470_s0 = sshll.u32 %s710_s24, 4  ;;  %v536_v11 = vpop.eup %535  ;;  %s471_s0 = int_to_ptr.vmem [resolvable:$true] %s470_s0 }
 0x165   :  { %v445_v10 = vadd.f32 0.5, %v444_v9  ;;  %s669_s25 = scalar_lea.vmem %s471_s0, 128  ;;  %p674_p7 = scmp.lt.s32.totalorder %s471_s0, %s471_s0 }
 0x166   :  { %p670_p6 = scmp.ne.s32.totalorder %s471_s0, %s669_s25  ;;  %p675_p8 = scmp.lt.s32.totalorder %s669_s25, %s669_s25 }
 0x167   :  { %v452_v12 = vmul.f32 %v536_v11, %v445_v10 }
 0x168   :  { %p676_p9 = por %p675_p8, %p674_p7 }
 0x169   :  { %453 = vst [vmem:[#allocation12] sm:$0xff] %v452_v12 }
 0x16a   :  { %p677_p10 = pnand %p676_p9, %p670_p6 }
 0x16c   :  { %680 = shalt.err (!%p677_p10)
}
 0x16d   :  { %s681_s6 = scalar_lea.hbm %s858_s7, 128 }
 0x16e   :  { %p682_p11 = scmp.ne.s32.totalorder %s858_s7, %s681_s6  ;;  %p685_p12 = scmp.lt.u32.totalorder %s681_s6, %s858_s7 }
 0x170   :  { %p687_p13 = pnand %p685_p12, %p682_p11 }
 0x172   :  { %690 = shalt.err (!%p687_p13)
}
 0x173   :  { %473 = dma.vmem_to_hbm [thread:$0]  %s471_s0, 128, %s858_s7, [#allocation13]  }
 0x174   :  { %697 = dma.done.wait [#allocation4], 128  }
 0x175   :  { %698 = vsyncadd [#allocation4], 4294967168 }
 0x176   :  { %699 = dma.done.wait [#allocation13], 128  }
 0x177   :  { %700 = vsyncadd [#allocation13], 4294967168 }
 0x178   :  { %480 = vsyncpa [#allocation3], 1 }
 0x179   :  { %481 = vsyncpa [#allocation6], 1 }
 0x17a   :  { %482 = vsyncpa [#allocation9], 1 }
 0x17b   :  { %483 = vsyncpa [#allocation4], 1 }
 0x17c   :  { %484 = vsyncpa [#allocation13], 1 }

// kernel: tpu_custom_call.1
= control target key start
LH: loop header
LB: loop body
LE: loop exit
PB: predicated region body
PF: predicated region fallthrough
CT: control target
= control target key end

     0   :  { %13 = vsyncpa [#allocation3], 0  ;;  %s851_s0 = inlined_call_operand.hbm [shape: f32[8,16], index: 0, kind: input, shape index: {}]   ;;  %s852_s1 = inlined_call_operand.hbm [shape: f32[8,32], index: 1, kind: input, shape index: {}]   ;;  %s853_s2 = inlined_call_operand.hbm [shape: f32[8,128], index: 2, kind: input, shape index: {}]   ;;  %s854_s3 = inlined_call_operand.hbm [shape: f32[16,512], index: 3, kind: input, shape index: {}]   ;;  %s855_s4 = inlined_call_operand.hbm [shape: f32[128,512], index: 4, kind: input, shape index: {}]   ;;  %s856_s5 = inlined_call_operand.vmem [shape: f32[1,512], index: 5, kind: input, shape index: {}]   ;;  %s857_s6 = inlined_call_operand.hbm [shape: f32[8,128], index: 6, kind: output, shape index: {0}]   ;;  %s858_s7 = inlined_call_operand.hbm [shape: f32[8,128], index: 7, kind: output, shape index: {1}]  }
   0x1   :  { %14 = vsyncpa [#allocation6], 0 }
   0x2   :  { %15 = vsyncpa [#allocation9], 0 }
   0x3   :  { %16 = vsyncpa [#allocation4], 0 }
   0x4   :  { %17 = vsyncpa [#allocation13], 0  ;;  %s701_s24 = smov [#allocation5]   ;;  %s702_s26 = smov [#allocation8]  }
   0x5   :  { %s34_s25 = sshll.u32 %s701_s24, 4  ;;  %s53_s27 = sshll.u32 %s702_s26, 4  ;;  %s35_s25 = int_to_ptr.vmem [resolvable:$true] %s34_s25  ;;  %s751_s27 = int_to_ptr.vmem [resolvable:$true] %s53_s27 }
   0x6   :  { %s537_s30 = scalar_lea.hbm %s852_s1, 128 }
   0x7   :  { %p538_p0 = scmp.ne.s32.totalorder %s852_s1, %s537_s30  ;;  %p541_p1 = scmp.lt.u32.totalorder %s537_s30, %s852_s1 }
   0x9   :  { %p543_p2 = pnand %p541_p1, %p538_p0 }
   0xb   :  { %546 = shalt.err (!%p543_p2)
}
   0xc   :  { %s547_s12 = scalar_lea.vmem %s35_s25, 128  ;;  %p552_p4 = scmp.lt.s32.totalorder %s35_s25, %s35_s25 }
   0xd   :  { %p548_p3 = scmp.ne.s32.totalorder %s35_s25, %s547_s12  ;;  %p553_p5 = scmp.lt.s32.totalorder %s547_s12, %s547_s12 }
   0xf   :  { %p554_p6 = por %p553_p5, %p552_p4 }
  0x11   :  { %p555_p7 = pnand %p554_p6, %p548_p3 }
  0x13   :  { %558 = shalt.err (!%p555_p7)
}
  0x14   :  { %37 = dma.hbm_to_vmem [thread:$0]  %s852_s1, 128, %s35_s25, [#allocation6]  }
  0x15   :  { %s559_s17 = scalar_lea.hbm %s854_s3, 1024 }
  0x16   :  { %p560_p8 = scmp.ne.s32.totalorder %s854_s3, %s559_s17  ;;  %p563_p9 = scmp.lt.u32.totalorder %s559_s17, %s854_s3 }
  0x18   :  { %p565_p10 = pnand %p563_p9, %p560_p8 }
  0x1a   :  { %568 = shalt.err (!%p565_p10)
}
  0x1b   :  { %s569_s22 = scalar_lea.vmem %s751_s27, 1024  ;;  %p574_p12 = scmp.lt.s32.totalorder %s751_s27, %s751_s27 }
  0x1c   :  { %p570_p11 = scmp.ne.s32.totalorder %s751_s27, %s569_s22  ;;  %p575_p13 = scmp.lt.s32.totalorder %s569_s22, %s569_s22 }
  0x1e   :  { %p576_p0 = por %p575_p13, %p574_p12 }
  0x20   :  { %p577_p1 = pnand %p576_p0, %p570_p11 }
  0x22   :  { %580 = shalt.err (!%p577_p1)
}
  0x23   :  { %s703_s1 = smov 512   ;;  %s704_s23 = smov 32  }
  0x24   :  { %59 = dma.hbm_to_vmem [thread:$0]  %s854_s3, 1024, %s751_s27, [#allocation9], %s703_s1, %s703_s1, %s704_s23  }
  0x25   :  { %s705_s26 = smov [#allocation2]   ;;  %s706_s29 = smov [#allocation7]  }
  0x26   :  { %s24_s28 = sshll.u32 %s705_s26, 4  ;;  %s44_s30 = sshll.u32 %s706_s29, 4  ;;  %s25_s28 = int_to_ptr.vmem [resolvable:$true] %s24_s28  ;;  %s45_s30 = int_to_ptr.vmem [resolvable:$true] %s44_s30 }
  0x27   :  { %s581_s10 = scalar_lea.hbm %s851_s0, 128 }
  0x28   :  { %p582_p2 = scmp.ne.s32.totalorder %s851_s0, %s581_s10  ;;  %p585_p3 = scmp.lt.u32.totalorder %s581_s10, %s851_s0 }
  0x2a   :  { %p587_p4 = pnand %p585_p3, %p582_p2 }
  0x2c   :  { %590 = shalt.err (!%p587_p4)
}
  0x2d   :  { %s591_s3 = scalar_lea.vmem %s25_s28, 128  ;;  %p596_p6 = scmp.lt.s32.totalorder %s25_s28, %s25_s28 }
  0x2e   :  { %p592_p5 = scmp.ne.s32.totalorder %s25_s28, %s591_s3  ;;  %p597_p7 = scmp.lt.s32.totalorder %s591_s3, %s591_s3 }
  0x30   :  { %p598_p8 = por %p597_p7, %p596_p6 }
  0x32   :  { %p599_p9 = pnand %p598_p8, %p592_p5 }
  0x34   :  { %602 = shalt.err (!%p599_p9)
}
  0x35   :  { %27 = dma.hbm_to_vmem [thread:$0]  %s851_s0, 128, %s25_s28, [#allocation3]  }
  0x36   :  { %s603_s18 = scalar_lea.hbm %s853_s2, 128 }
  0x37   :  { %p604_p10 = scmp.ne.s32.totalorder %s853_s2, %s603_s18  ;;  %p607_p11 = scmp.lt.u32.totalorder %s603_s18, %s853_s2 }
  0x39   :  { %p609_p12 = pnand %p607_p11, %p604_p10 }
  0x3b   :  { %612 = shalt.err (!%p609_p12)
}
  0x3c   :  { %s613_s24 = scalar_lea.vmem %s45_s30, 128  ;;  %p618_p0 = scmp.lt.s32.totalorder %s45_s30, %s45_s30 }
  0x3d   :  { %p614_p13 = scmp.ne.s32.totalorder %s45_s30, %s613_s24  ;;  %p619_p1 = scmp.lt.s32.totalorder %s613_s24, %s613_s24 }
  0x3f   :  { %p620_p2 = por %p619_p1, %p618_p0 }
  0x41   :  { %p621_p3 = pnand %p620_p2, %p614_p13 }
  0x43   :  { %624 = shalt.err (!%p621_p3)
}
  0x44   :  { %47 = dma.hbm_to_vmem [thread:$0]  %s853_s2, 128, %s45_s30, [#allocation6]  }
  0x45   :  { %s707_s26 = smov [#allocation10]   ;;  %s625_s9 = scalar_lea.hbm %s855_s4, 8192 }
  0x46   :  { %s65_s28 = sshll.u32 %s707_s26, 4  ;;  %p626_p4 = scmp.ne.s32.totalorder %s855_s4, %s625_s9  ;;  %s66_s28 = int_to_ptr.vmem [resolvable:$true] %s65_s28 }
  0x47   :  { %p629_p5 = scmp.lt.u32.totalorder %s625_s9, %s855_s4 }
  0x49   :  { %p631_p6 = pnand %p629_p5, %p626_p4 }
  0x4b   :  { %634 = shalt.err (!%p631_p6)
}
  0x4c   :  { %s635_s14 = scalar_lea.vmem %s66_s28, 8192  ;;  %p640_p8 = scmp.lt.s32.totalorder %s66_s28, %s66_s28 }
  0x4d   :  { %p636_p7 = scmp.ne.s32.totalorder %s66_s28, %s635_s14  ;;  %p641_p9 = scmp.lt.s32.totalorder %s635_s14, %s635_s14 }
  0x4f   :  { %p642_p10 = por %p641_p9, %p640_p8 }
  0x51   :  { %p643_p11 = pnand %p642_p10, %p636_p7 }
  0x53   :  { %646 = shalt.err (!%p643_p11)
}
  0x54   :  { %71 = dma.hbm_to_vmem [thread:$0]  %s855_s4, 8192, %s66_s28, [#allocation9], %s703_s1, %s703_s1, %s704_s23  }
  0x55   :  { %691 = dma.done.wait [#allocation3], 128  }
  0x56   :  { %692 = vsyncadd [#allocation3], 4294967168 }
  0x57   :  { %693 = dma.done.wait [#allocation6], 256  }
  0x58   :  { %694 = vsyncadd [#allocation6], 4294967040 }
  0x59   :  { %695 = dma.done.wait [#allocation9], 9216  }
  0x5a   :  { %696 = vsyncadd [#allocation9], 4294958080  ;;  %v708_v0 = vmov 0.0   ;;  %v98_v1 = vld [vmem:[#allocation10 + $0x8] sm:$0xff]  ;;  %v100_v3 = vld [vmem:[#allocation10 + $0x18] sm:$0xff]  ;;  %vm115_vm0 = vcmask 261120   ;;  %v409_v39 = vlaneseq }
  0x5b   :  { %183 = vmatprep.mubr.f32.mxu0 %v708_v0  ;;  %254 = vmatprep.mubr.f32.mxu1 %v708_v0  ;;  %v102_v2 = vld [vmem:[#allocation10 + $0x28] sm:$0xff]  ;;  %v104_v5 = vld [vmem:[#allocation10 + $0x38] sm:$0xff]  ;;  %v97_v6 = vld [vmem:[#allocation10] sm:$0xff]  ;;  %vm261_vm1 = vcmask 130048  }
  0x5c   :  { %v489_v4 = vpack.c.bf16 %v102_v2, %v98_v1  ;;  %v101_v7 = vld [vmem:[#allocation10 + $0x20] sm:$0xff]  ;;  %v497_v8 = vpack.c.bf16 %v104_v5, %v100_v3  ;;  %v99_v10 = vld [vmem:[#allocation10 + $0x10] sm:$0xff]  ;;  %v106_v12 = vld [vmem:[#allocation10 + $0x48] sm:$0xff]  ;;  %v410_v40 = vshrl.u32 %v409_v39, 7 }
  0x5d   :  { %v491_v9 = vpack.c.bf16 %v101_v7, %v97_v6  ;;  %v103_v11 = vld [vmem:[#allocation10 + $0x30] sm:$0xff]  ;;  %v110_v14 = vld [vmem:[#allocation10 + $0x68] sm:$0xff]  ;;  %v108_v15 = vld [vmem:[#allocation10 + $0x58] sm:$0xff] }
  0x5e   :  { %490 = vmatprep.subr.bf16.mxu0 %v489_v4  ;;  %v499_v13 = vpack.c.bf16 %v103_v11, %v99_v10  ;;  %v112_v16 = vld [vmem:[#allocation10 + $0x78] sm:$0xff]  ;;  %498 = vmatprep.subr.bf16.mxu1 %v497_v8  ;;  %v493_v17 = vpack.c.bf16 %v110_v14, %v106_v12  ;;  %v105_v19 = vld [vmem:[#allocation10 + $0x40] sm:$0xff]  ;;  %v107_v21 = vld [vmem:[#allocation10 + $0x50] sm:$0xff]  ;;  %v411_v41 = vsub.s32 0, %v410_v40  ;;  %v415_v43 = vsub.s32 1, %v410_v40 }
  0x5f   :  { %492 = vmatpush1.bf16.msra.mxu0 %v491_v9  ;;  %v501_v18 = vpack.c.bf16 %v112_v16, %v108_v15  ;;  %v109_v20 = vld [vmem:[#allocation10 + $0x60] sm:$0xff]  ;;  %v111_v23 = vld [vmem:[#allocation10 + $0x70] sm:$0xff]  ;;  %v90_v24 = vld [vmem:[#allocation8 + $0x8] sm:$0xff]  ;;  %v419_v45 = vsub.s32 2, %v410_v40  ;;  %v423_v52 = vsub.s32 3, %v410_v40 }
  0x60   :  { %500 = vmatpush1.bf16.msra.mxu1 %v499_v13  ;;  %v495_v22 = vpack.c.bf16 %v109_v20, %v105_v19  ;;  %494 = vmatprep.subr.bf16.mxu0 %v493_v17  ;;  %v503_v25 = vpack.c.bf16 %v111_v23, %v107_v21  ;;  %v94_v26 = vld [vmem:[#allocation8 + $0x28] sm:$0xff]  ;;  %v89_v27 = vld [vmem:[#allocation8] sm:$0xff]  ;;  %v92_v30 = vld [vmem:[#allocation8 + $0x18] sm:$0xff] }
  0x61   :  { %502 = vmatprep.subr.bf16.mxu1 %v501_v18  ;;  %v93_v28 = vld [vmem:[#allocation8 + $0x20] sm:$0xff]  ;;  %v505_v29 = vpack.c.bf16 %v94_v26, %v90_v24  ;;  %v96_v31 = vld [vmem:[#allocation8 + $0x38] sm:$0xff]  ;;  %v91_v32 = vld [vmem:[#allocation8 + $0x10] sm:$0xff] }
  0x62   :  { %v114_v33 = vld [vmem:[#allocation5] sm:$0xff]  ;;  %v507_v34 = vpack.c.bf16 %v93_v28, %v89_v27  ;;  %v509_v35 = vpack.c.bf16 %v96_v31, %v92_v30  ;;  %v113_v38 = vld [vmem:[#allocation2] sm:$0xff]  ;;  %v446_v2 = vld [vmem:[#allocation7] sm:$0xff] }
  0x63   :  { %496 = vmatpush1.bf16.msra.mxu0 %v495_v22  ;;  %v95_v36 = vld [vmem:[#allocation8 + $0x30] sm:$0xff]  ;;  %v407_v42 = vld [vmem:[%s856_s5] sm:$0xf]  ;;  %s709_s5 = smov [#allocation11]  }
  0x64   :  { %504 = vmatpush1.bf16.msra.mxu1 %v503_v25  ;;  %506 = vmatprep.subr.bf16.mxu0 %v505_v29  ;;  %v511_v37 = vpack.c.bf16 %v95_v36, %v91_v32  ;;  %v412_v44 = vrot.slane %v407_v42, %v411_v41  ;;  %v416_v46 = vrot.slane %v407_v42, %v415_v43  ;;  %s460_s23 = sshll.u32 %s709_s5, 4  ;;  %s461_s23 = int_to_ptr.vmem [resolvable:$true] %s460_s23 }
  0x65   :  { %510 = vmatprep.subr.bf16.mxu1 %v509_v35  ;;  %v420_v50 = vrot.slane %v407_v42, %v419_v45  ;;  %v424_v58 = vrot.slane %v407_v42, %v423_v52  ;;  %s647_s3 = scalar_lea.vmem %s461_s23, 128  ;;  %p652_p13 = scmp.lt.s32.totalorder %s461_s23, %s461_s23 }
  0x66   :  { %485 = vmatmul.mubr.msk.f32.vlgmr.msra.gmra.mrb[0].mxu0 %vm115_vm0, %v114_v33  ;;  %p648_p12 = scmp.ne.s32.totalorder %s461_s23, %s647_s3  ;;  %p653_p0 = scmp.lt.s32.totalorder %s647_s3, %s647_s3 }
  0x67   :  { %486 = vmatmul.mubr.msk.f32.vlgmr.msra.gmra.mrb[0].mxu1 %vm115_vm0, %v114_v33  ;;  %508 = vmatpush1.bf16.msra.mxu0 %v507_v34 }
  0x68   :  { %512 = vmatpush1.bf16.msra.mxu1 %v511_v37  ;;  %329 = vmatprep.mubr.f32.mxu0 %v708_v0  ;;  %p654_p1 = por %p653_p0, %p652_p13 }
  0x69   :  { %400 = vmatprep.mubr.f32.mxu1 %v708_v0 }
  0x6a   :  { %p655_p2 = pnand %p654_p1, %p648_p12 }
  0x6e   :  { %487 = vmatmul.mubr.msk.f32.vlgmr.msra.gmra.mrb[0].mxu0 %vm261_vm1, %v113_v38 }
  0x6f   :  { %488 = vmatmul.mubr.msk.f32.vlgmr.msra.gmra.mrb[0].mxu1 %vm261_vm1, %v113_v38 }
 0x141   :  { %v331_v47 = vpop.f32.mrb[0].mxu0 }
 0x142   :  { %v429_v48 = vadd.f32 %v412_v44, %v331_v47  ;;  %v402_v49 = vpop.f32.mrb[0].mxu1  ;;  %v333_v51 = vpop.f32.mrb[1].mxu0 }
 0x143   :  { %v430_v53 = vadd.f32 %v416_v46, %v333_v51  ;;  %v404_v54 = vpop.f32.mrb[1].mxu1  ;;  %v431_v57 = vadd.f32 %v420_v50, %v402_v49 }
 0x144   :  { %v433_v55 = vmul.f32 0.5, %v429_v48  ;;  %v432_v59 = vadd.f32 %v424_v58, %v404_v54 }
 0x145   :  { %v437_v56 = vmul.f32 0.5, %v430_v53 }
 0x146   :  { %527 = vtanh.f32 %v433_v55  ;;  %v442_v60 = vmul.f32 0.5, %v432_v59 }
 0x147   :  { %529 = vtanh.f32 %v437_v56 }
 0x148   :  { %531 = vtanh.f32 %v431_v57 }
 0x149   :  { %533 = vtanh.f32 %v442_v60 }
 0x150   :  { %v528_v61 = vpop.eup %527 }
 0x151   :  { %v530_v62 = vpop.eup %529  ;;  %v435_v63 = vmul.f32 0.5, %v528_v61 }
 0x152   :  { %v439_v0 = vmul.f32 0.5, %v530_v62  ;;  %v532_v3 = vpop.eup %531 }
 0x153   :  { %v436_v1 = vadd.f32 0.5, %v435_v63 }
 0x154   :  { %v440_v4 = vadd.f32 0.5, %v439_v0 }
 0x155   :  { %v448_v5 = vmul.f32 %v532_v3, %v436_v1 }
 0x156   :  { %v447_v6 = vmul.f32 %v446_v2, %v440_v4 }
 0x158   :  { %v449_v7 = vadd.f32 %v448_v5, %v447_v6 }
 0x15a   :  { %450 = vst [vmem:[#allocation11] sm:$0xff] %v449_v7  ;;  %535 = vtanh.f32 %v449_v7 }
 0x15b   :  { %658 = shalt.err (!%p655_p2)
}
 0x15c   :  { %s659_s16 = scalar_lea.hbm %s857_s6, 128 }
 0x15d   :  { %p660_p3 = scmp.ne.s32.totalorder %s857_s6, %s659_s16  ;;  %p663_p4 = scmp.lt.u32.totalorder %s659_s16, %s857_s6 }
 0x15f   :  { %p665_p5 = pnand %p663_p4, %p660_p3 }
 0x161   :  { %668 = shalt.err (!%p665_p5)
}
 0x162   :  { %463 = dma.vmem_to_hbm [thread:$0]  %s461_s23, 128, %s857_s6, [#allocation4]   ;;  %v534_v8 = vpop.eup %533 }
 0x163   :  { %v444_v9 = vmul.f32 0.5, %v534_v8  ;;  %s710_s24 = smov [#allocation12]  }
 0x164   :  { %s470_s0 = sshll.u32 %s710_s24, 4  ;;  %v536_v11 = vpop.eup %535  ;;  %s471_s0 = int_to_ptr.vmem [resolvable:$true] %s470_s0 }
 0x165   :  { %v445_v10 = vadd.f32 0.5, %v444_v9  ;;  %s669_s25 = scalar_lea.vmem %s471_s0, 128  ;;  %p674_p7 = scmp.lt.s32.totalorder %s471_s0, %s471_s0 }
 0x166   :  { %p670_p6 = scmp.ne.s32.totalorder %s471_s0, %s669_s25  ;;  %p675_p8 = scmp.lt.s32.totalorder %s669_s25, %s669_s25 }
 0x167   :  { %v452_v12 = vmul.f32 %v536_v11, %v445_v10 }
 0x168   :  { %p676_p9 = por %p675_p8, %p674_p7 }
 0x169   :  { %453 = vst [vmem:[#allocation12] sm:$0xff] %v452_v12 }
 0x16a   :  { %p677_p10 = pnand %p676_p9, %p670_p6 }
 0x16c   :  { %680 = shalt.err (!%p677_p10)
}
 0x16d   :  { %s681_s6 = scalar_lea.hbm %s858_s7, 128 }
 0x16e   :  { %p682_p11 = scmp.ne.s32.totalorder %s858_s7, %s681_s6  ;;  %p685_p12 = scmp.lt.u32.totalorder %s681_s6, %s858_s7 }
 0x170   :  { %p687_p13 = pnand %p685_p12, %p682_p11 }
 0x172   :  { %690 = shalt.err (!%p687_p13)
}
 0x173   :  { %473 = dma.vmem_to_hbm [thread:$0]  %s471_s0, 128, %s858_s7, [#allocation13]  }
 0x174   :  { %697 = dma.done.wait [#allocation4], 128  }
 0x175   :  { %698 = vsyncadd [#allocation4], 4294967168 }
 0x176   :  { %699 = dma.done.wait [#allocation13], 128  }
 0x177   :  { %700 = vsyncadd [#allocation13], 4294967168 }
 0x178   :  { %480 = vsyncpa [#allocation3], 1 }
 0x179   :  { %481 = vsyncpa [#allocation6], 1 }
 0x17a   :  { %482 = vsyncpa [#allocation9], 1 }
 0x17b   :  { %483 = vsyncpa [#allocation4], 1 }
 0x17c   :  { %484 = vsyncpa [#allocation13], 1 }

</bundles_post_ra>
